<compile_context>
chip_gen: v5e
topology: v5e:2x2
jax: 0.10.0
libtpu: 0.0.40
codegen_flags: <defaults>
</compile_context>

<pallas_src>
import functools

import jax
import jax.numpy as jnp
from jax.experimental import pallas as pl
from jax.experimental.pallas import tpu as pltpu

_LANES = 128
_SUBLANES = 8
_NEG_BIG = -1e30                            # finite "-inf" for padded lanes
_RESIDENT_VMEM_BUDGET = 12 * 1024 * 1024    # table budget (fits v5e's 16 MiB default)
_MAX_ROWS_PER_TILE = 256


def _round_up(x, m):
    return ((x + m - 1) // m) * m


# ---------------------------------------------------------------------------
# Resident-table batched kernels (main path).
# ---------------------------------------------------------------------------

def _gather_rows(ids_ref, emb_ref, out_ref, base, rows_per_tile):
    """Copy table rows emb[ids[base + r]] -> out[r] for r in [0, rows_per_tile)."""
    unroll = rows_per_tile <= 32

    def body(r, carry):
        row_id = ids_ref[base + r]
        out_ref[pl.ds(r, 1), :] = emb_ref[pl.ds(row_id, 1), :]
        return carry

    jax.lax.fori_loop(0, rows_per_tile, body, 0, unroll=unroll)


def _resident_gather_kernel(ids_ref, emb_ref, logits_ref, *, rows_per_tile):
    base = pl.program_id(0) * rows_per_tile
    _gather_rows(ids_ref, emb_ref, logits_ref, base, rows_per_tile)


def _resident_gather_ce_kernel(ids_ref, emb_ref, tgt_ref, logits_ref, part_ref,
                               *, valid_v, rows_per_tile, total_rows):
    base = pl.program_id(0) * rows_per_tile

    # 1) Gather this tile's logits rows straight into the dense output tile.
    _gather_rows(ids_ref, emb_ref, logits_ref, base, rows_per_tile)

    # 2) Fused cross entropy on the freshly written (R, Vp) tile.
    rows = logits_ref[...]                                        # (R, Vp) f32
    col = jax.lax.broadcasted_iota(jnp.int32, rows.shape, 1)

    masked = jnp.where(col < valid_v, rows, _NEG_BIG)             # mask pad lanes
    m = jnp.max(masked, axis=-1, keepdims=True)                   # (R, 1)
    lse = m + jnp.log(jnp.sum(jnp.exp(masked - m), axis=-1, keepdims=True))

    tgt = tgt_ref[...]                                            # (R, 1) int32
    picked = jnp.sum(jnp.where(col == tgt, rows, 0.0), axis=-1, keepdims=True)

    # 3) Per-tile partial sum; rows past the real B*T count contribute 0.
    row_ids = base + jax.lax.broadcasted_iota(jnp.int32, (rows_per_tile, 1), 0)
    contrib = jnp.where(row_ids < total_rows, lse - picked, 0.0)
    part_ref[...] = jnp.sum(contrib, axis=(0, 1), keepdims=True)  # (1, 1)


# ---------------------------------------------------------------------------
# Per-row DMA-gather fallback (large vocab; proven but slower).
# ---------------------------------------------------------------------------

def _row_gather_kernel(ids_ref, emb_ref, logits_ref):
    del ids_ref                      # consumed by the index_map only
    logits_ref[...] = emb_ref[...]


def _row_gather_ce_kernel(ids_ref, tgt_ref, emb_ref, logits_ref, loss_ref,
                          acc_ref, *, valid_v):
    del ids_ref
    i = pl.program_id(0)
    n = pl.num_programs(0)

    row = emb_ref[...]                                            # (1, Vp)
    logits_ref[...] = row
    col = jax.lax.broadcasted_iota(jnp.int32, row.shape, 1)

    masked = jnp.where(col < valid_v, row, _NEG_BIG)
    m = jnp.max(masked, axis=-1, keepdims=True)
    lse = m + jnp.log(jnp.sum(jnp.exp(masked - m), axis=-1, keepdims=True))

    tgt = tgt_ref[i]
    picked = jnp.sum(jnp.where(col == tgt, row, 0.0), axis=-1, keepdims=True)

    @pl.when(i == 0)
    def _():
        acc_ref[...] = jnp.zeros_like(acc_ref)

    acc_ref[...] += lse - picked

    @pl.when(i == n - 1)
    def _():
        loss_ref[...] = acc_ref[...] * (1.0 / n)


def _rowwise_fallback_with_loss(ids, tgts, emb_padded, valid_v):
    BT = ids.shape[0]
    Vp = emb_padded.shape[1]
    kernel = functools.partial(_row_gather_ce_kernel, valid_v=valid_v)
    logits_p, loss = pl.pallas_call(
        kernel,
        out_shape=(jax.ShapeDtypeStruct((BT, Vp), jnp.float32),
                   jax.ShapeDtypeStruct((1, 1), jnp.float32)),
        grid_spec=pltpu.PrefetchScalarGridSpec(
            num_scalar_prefetch=2,
            grid=(BT,),
            in_specs=[pl.BlockSpec((1, Vp), lambda i, ids, tgt: (ids[i], 0))],
            out_specs=[pl.BlockSpec((1, Vp), lambda i, ids, tgt: (i, 0)),
                       pl.BlockSpec((1, 1), lambda i, ids, tgt: (0, 0))],
            scratch_shapes=[pltpu.VMEM((1, 1), jnp.float32)],
        ),
        compiler_params=pltpu.CompilerParams(
            dimension_semantics=("arbitrary",)),
    )(ids, tgts, emb_padded)
    return logits_p[:, :valid_v], loss[0, 0]


def _rowwise_fallback_logits(ids, emb_padded, valid_v):
    BT = ids.shape[0]
    Vp = emb_padded.shape[1]
    logits_p = pl.pallas_call(
        _row_gather_kernel,
        out_shape=jax.ShapeDtypeStruct((BT, Vp), jnp.float32),
        grid_spec=pltpu.PrefetchScalarGridSpec(
            num_scalar_prefetch=1,
            grid=(BT,),
            in_specs=[pl.BlockSpec((1, Vp), lambda i, ids: (ids[i], 0))],
            out_specs=pl.BlockSpec((1, Vp), lambda i, ids: (i, 0)),
        ),
        compiler_params=pltpu.CompilerParams(
            dimension_semantics=("parallel",)),
    )(ids, emb_padded)
    return logits_p[:, :valid_v]


# ---------------------------------------------------------------------------
# Jitted forwards + public API.
# ---------------------------------------------------------------------------

@functools.partial(jax.jit, static_argnames=("valid_v",))
def _forward_with_loss(idx, targets, emb_padded, valid_v):
    B, T = idx.shape
    V = valid_v
    Vtab, Vp = emb_padded.shape
    BT = B * T

    ids = jnp.clip(idx.reshape(BT).astype(jnp.int32), 0, V - 1)
    tgts = jnp.clip(targets.reshape(BT).astype(jnp.int32), 0, V - 1)

    if emb_padded.size * 4 <= _RESIDENT_VMEM_BUDGET:
        R = min(_MAX_ROWS_PER_TILE, _round_up(BT, _SUBLANES))
        BTp = _round_up(BT, R)
        n_tiles = BTp // R

        ids_p = jnp.pad(ids, (0, BTp - BT))
        tgt_col = jnp.pad(tgts, (0, BTp - BT)).reshape(BTp, 1)

        kernel = functools.partial(_resident_gather_ce_kernel, valid_v=V,
                                   rows_per_tile=R, total_rows=BT)

        logits_p, partials = pl.pallas_call(
            kernel,
            out_shape=(jax.ShapeDtypeStruct((BTp, Vp), jnp.float32),
                       jax.ShapeDtypeStruct((n_tiles, 1), jnp.float32)),
            grid_spec=pltpu.PrefetchScalarGridSpec(
                num_scalar_prefetch=1,                 # ids -> SMEM
                grid=(n_tiles,),
                in_specs=[
                    # Whole padded table resident in VMEM (constant block index).
                    pl.BlockSpec((Vtab, Vp), lambda i, ids: (0, 0)),
                    pl.BlockSpec((R, 1), lambda i, ids: (i, 0)),
                ],
                out_specs=[
                    pl.BlockSpec((R, Vp), lambda i, ids: (i, 0)),
                    pl.BlockSpec((1, 1), lambda i, ids: (i, 0)),
                ],
            ),
            compiler_params=pltpu.CompilerParams(
                dimension_semantics=("parallel",)),    # independent tiles
        )(ids_p, emb_padded, tgt_col)

        loss = jnp.sum(partials) * (1.0 / BT)          # tree-sum mean in wrapper
        logits = logits_p[:BT, :V]
    else:
        logits, loss = _rowwise_fallback_with_loss(ids, tgts, emb_padded, V)

    # PyTorch returns the flattened (B*T, V) view when targets are provided.
    return logits, loss


@functools.partial(jax.jit, static_argnames=("valid_v",))
def _forward_logits_only(idx, emb_padded, valid_v):
    B, T = idx.shape
    V = valid_v
    Vtab, Vp = emb_padded.shape
    BT = B * T

    ids = jnp.clip(idx.reshape(BT).astype(jnp.int32), 0, V - 1)

    if emb_padded.size * 4 <= _RESIDENT_VMEM_BUDGET:
        R = min(_MAX_ROWS_PER_TILE, _round_up(BT, _SUBLANES))
        BTp = _round_up(BT, R)
        n_tiles = BTp // R
        ids_p = jnp.pad(ids, (0, BTp - BT))

        logits_p = pl.pallas_call(
            functools.partial(_resident_gather_kernel, rows_per_tile=R),
            out_shape=jax.ShapeDtypeStruct((BTp, Vp), jnp.float32),
            grid_spec=pltpu.PrefetchScalarGridSpec(
                num_scalar_prefetch=1,
                grid=(n_tiles,),
                in_specs=[pl.BlockSpec((Vtab, Vp), lambda i, ids: (0, 0))],
                out_specs=pl.BlockSpec((R, Vp), lambda i, ids: (i, 0)),
            ),
            compiler_params=pltpu.CompilerParams(
                dimension_semantics=("parallel",)),
        )(ids_p, emb_padded)
        logits = logits_p[:BT, :V]
    else:
        logits = _rowwise_fallback_logits(ids, emb_padded, V)

    return logits.reshape(B, T, V)


def prepare_embedding(emb_table):
    """Pad/cast the (V, V) embedding table once, outside the hot path."""
    V = emb_table.shape[1]
    Vp = _round_up(V, _LANES)
    emb_padded = jnp.pad(emb_table.astype(jnp.float32), ((0, 0), (0, Vp - V)))
    return emb_padded, V


def bigram_forward(idx, params, targets=None):
    """Mirror of BigramLanguageModel.forward -> (logits, loss).

    params = prepare_embedding(weight).
    targets is None -> logits (B, T, V), loss None  (generate path).
    otherwise       -> logits (B*T, V), scalar mean cross-entropy (matches the
                       PyTorch .view(B*T, C) behaviour).
    """
    emb_padded, valid_v = params
    if targets is None:
        return _forward_logits_only(idx, emb_padded, valid_v), None
    return _forward_with_loss(idx, targets, emb_padded, valid_v)


if __name__ == "__main__":
    vocab_size = 64
    B, T = 2, 8

    key = jax.random.PRNGKey(0)
    k_emb, k_idx, k_tgt = jax.random.split(key, 3)

    # nn.Embedding(vocab, vocab) weight ~ N(0, 1), deterministic init here.
    emb_table = jax.random.normal(k_emb, (vocab_size, vocab_size),
                                  dtype=jnp.float32)
    idx = jax.random.randint(k_idx, (B, T), 0, vocab_size, dtype=jnp.int32)
    targets = jax.random.randint(k_tgt, (B, T), 0, vocab_size, dtype=jnp.int32)

    params = prepare_embedding(emb_table)          # pad/cast hoisted out of hot path

    # Loss path (training): logits flattened to (B*T, V) like the PyTorch view.
    logits, loss = bigram_forward(idx, params, targets)
    jax.block_until_ready((logits, loss))

    # Pure-JAX reference.
    ref_logits_btv = emb_table[idx]                                 # (B, T, V)
    flat = ref_logits_btv.reshape(B * T, vocab_size)
    lse = jax.scipy.special.logsumexp(flat, axis=-1)
    picked = jnp.take_along_axis(flat, targets.reshape(-1, 1), axis=-1)[:, 0]
    ref_loss = jnp.mean(lse - picked)

    assert logits.shape == (B * T, vocab_size)
    assert jnp.allclose(logits, flat, atol=1e-5)
    assert jnp.allclose(loss, ref_loss, atol=1e-5)

    # Logits-only path (targets=None, generate()): (B, T, V), loss is None.
    logits_only, loss_none = bigram_forward(idx, params, None)
    jax.block_until_ready(logits_only)
    assert loss_none is None
    assert logits_only.shape == (B, T, vocab_size)
    assert jnp.allclose(logits_only, ref_logits_btv, atol=1e-5)

    print("KERNEL_OK")
</pallas_src>

<mosaic_0001>
module attributes {stable_mosaic.version = 11 : i64} {
  func.func @_resident_gather_ce_kernel(%arg0: i32, %arg1: memref<16xi32, #tpu.memory_space<smem>>, %arg2: memref<64x128xf32, #tpu.memory_space<vmem>>, %arg3: memref<16x1xi32, #tpu.memory_space<vmem>>, %arg4: memref<16x128xf32, #tpu.memory_space<vmem>>, %arg5: memref<1x1xf32, #tpu.memory_space<vmem>>) attributes {dimension_semantics = [#tpu.dimension_semantics<parallel>], iteration_bounds = array<i64: 1>, scalar_prefetch = 1 : i64, scratch_operands = 0 : i64, tpu.core_type = #tpu.core_type<tc>, window_params = [{pipeline_mode = #tpu.pipeline_mode<synchronous>, transform_indices = @transform_0, window_bounds = array<i64: 64, 128>}, {transform_indices = @transform_1, window_bounds = array<i64: 16, 1>}, {transform_indices = @transform_2, window_bounds = array<i64: 16, 128>}, {transform_indices = @transform_3, window_bounds = array<i64: 1, 1>}]} {
    %c16_i32 = arith.constant 16 : i32
    %0 = arith.muli %arg0, %c16_i32 : i32
    %c0_i32 = arith.constant 0 : i32
    %1 = arith.addi %0, %c0_i32 : i32
    %2 = arith.index_cast %1 : i32 to index
    %3 = memref.load %arg1[%2] : memref<16xi32, #tpu.memory_space<smem>>
    %4 = arith.index_cast %3 : i32 to index
    %c0 = arith.constant 0 : index
    %5 = vector.load %arg2[%4, %c0] : memref<64x128xf32, #tpu.memory_space<vmem>>, vector<1x128xf32>
    %6 = arith.index_cast %c0_i32 : i32 to index
    %c0_0 = arith.constant 0 : index
    %7 = vector.load %arg4[%6, %c0_0] : memref<16x128xf32, #tpu.memory_space<vmem>>, vector<1x128xf32>
    tpu.vector_store %arg4[%6, %c0_0], %5 {strides = array<i32>} : memref<16x128xf32, #tpu.memory_space<vmem>>, vector<1x128xf32>,
    %c1_i32 = arith.constant 1 : i32
    %8 = arith.addi %0, %c1_i32 : i32
    %9 = arith.index_cast %8 : i32 to index
    %10 = memref.load %arg1[%9] : memref<16xi32, #tpu.memory_space<smem>>
    %11 = arith.index_cast %10 : i32 to index
    %c0_1 = arith.constant 0 : index
    %12 = vector.load %arg2[%11, %c0_1] : memref<64x128xf32, #tpu.memory_space<vmem>>, vector<1x128xf32>
    %13 = arith.index_cast %c1_i32 : i32 to index
    %c0_2 = arith.constant 0 : index
    %14 = vector.load %arg4[%13, %c0_2] : memref<16x128xf32, #tpu.memory_space<vmem>>, vector<1x128xf32>
    tpu.vector_store %arg4[%13, %c0_2], %12 {strides = array<i32>} : memref<16x128xf32, #tpu.memory_space<vmem>>, vector<1x128xf32>,
    %c2_i32 = arith.constant 2 : i32
    %15 = arith.addi %0, %c2_i32 : i32
    %16 = arith.index_cast %15 : i32 to index
    %17 = memref.load %arg1[%16] : memref<16xi32, #tpu.memory_space<smem>>
    %18 = arith.index_cast %17 : i32 to index
    %c0_3 = arith.constant 0 : index
    %19 = vector.load %arg2[%18, %c0_3] : memref<64x128xf32, #tpu.memory_space<vmem>>, vector<1x128xf32>
    %20 = arith.index_cast %c2_i32 : i32 to index
    %c0_4 = arith.constant 0 : index
    %21 = vector.load %arg4[%20, %c0_4] : memref<16x128xf32, #tpu.memory_space<vmem>>, vector<1x128xf32>
    tpu.vector_store %arg4[%20, %c0_4], %19 {strides = array<i32>} : memref<16x128xf32, #tpu.memory_space<vmem>>, vector<1x128xf32>,
    %c3_i32 = arith.constant 3 : i32
    %22 = arith.addi %0, %c3_i32 : i32
    %23 = arith.index_cast %22 : i32 to index
    %24 = memref.load %arg1[%23] : memref<16xi32, #tpu.memory_space<smem>>
    %25 = arith.index_cast %24 : i32 to index
    %c0_5 = arith.constant 0 : index
    %26 = vector.load %arg2[%25, %c0_5] : memref<64x128xf32, #tpu.memory_space<vmem>>, vector<1x128xf32>
    %27 = arith.index_cast %c3_i32 : i32 to index
    %c0_6 = arith.constant 0 : index
    %28 = vector.load %arg4[%27, %c0_6] : memref<16x128xf32, #tpu.memory_space<vmem>>, vector<1x128xf32>
    tpu.vector_store %arg4[%27, %c0_6], %26 {strides = array<i32>} : memref<16x128xf32, #tpu.memory_space<vmem>>, vector<1x128xf32>,
    %c4_i32 = arith.constant 4 : i32
    %29 = arith.addi %0, %c4_i32 : i32
    %30 = arith.index_cast %29 : i32 to index
    %31 = memref.load %arg1[%30] : memref<16xi32, #tpu.memory_space<smem>>
    %32 = arith.index_cast %31 : i32 to index
    %c0_7 = arith.constant 0 : index
    %33 = vector.load %arg2[%32, %c0_7] : memref<64x128xf32, #tpu.memory_space<vmem>>, vector<1x128xf32>
    %34 = arith.index_cast %c4_i32 : i32 to index
    %c0_8 = arith.constant 0 : index
    %35 = vector.load %arg4[%34, %c0_8] : memref<16x128xf32, #tpu.memory_space<vmem>>, vector<1x128xf32>
    tpu.vector_store %arg4[%34, %c0_8], %33 {strides = array<i32>} : memref<16x128xf32, #tpu.memory_space<vmem>>, vector<1x128xf32>,
    %c5_i32 = arith.constant 5 : i32
    %36 = arith.addi %0, %c5_i32 : i32
    %37 = arith.index_cast %36 : i32 to index
    %38 = memref.load %arg1[%37] : memref<16xi32, #tpu.memory_space<smem>>
    %39 = arith.index_cast %38 : i32 to index
    %c0_9 = arith.constant 0 : index
    %40 = vector.load %arg2[%39, %c0_9] : memref<64x128xf32, #tpu.memory_space<vmem>>, vector<1x128xf32>
    %41 = arith.index_cast %c5_i32 : i32 to index
    %c0_10 = arith.constant 0 : index
    %42 = vector.load %arg4[%41, %c0_10] : memref<16x128xf32, #tpu.memory_space<vmem>>, vector<1x128xf32>
    tpu.vector_store %arg4[%41, %c0_10], %40 {strides = array<i32>} : memref<16x128xf32, #tpu.memory_space<vmem>>, vector<1x128xf32>,
    %c6_i32 = arith.constant 6 : i32
    %43 = arith.addi %0, %c6_i32 : i32
    %44 = arith.index_cast %43 : i32 to index
    %45 = memref.load %arg1[%44] : memref<16xi32, #tpu.memory_space<smem>>
    %46 = arith.index_cast %45 : i32 to index
    %c0_11 = arith.constant 0 : index
    %47 = vector.load %arg2[%46, %c0_11] : memref<64x128xf32, #tpu.memory_space<vmem>>, vector<1x128xf32>
    %48 = arith.index_cast %c6_i32 : i32 to index
    %c0_12 = arith.constant 0 : index
    %49 = vector.load %arg4[%48, %c0_12] : memref<16x128xf32, #tpu.memory_space<vmem>>, vector<1x128xf32>
    tpu.vector_store %arg4[%48, %c0_12], %47 {strides = array<i32>} : memref<16x128xf32, #tpu.memory_space<vmem>>, vector<1x128xf32>,
    %c7_i32 = arith.constant 7 : i32
    %50 = arith.addi %0, %c7_i32 : i32
    %51 = arith.index_cast %50 : i32 to index
    %52 = memref.load %arg1[%51] : memref<16xi32, #tpu.memory_space<smem>>
    %53 = arith.index_cast %52 : i32 to index
    %c0_13 = arith.constant 0 : index
    %54 = vector.load %arg2[%53, %c0_13] : memref<64x128xf32, #tpu.memory_space<vmem>>, vector<1x128xf32>
    %55 = arith.index_cast %c7_i32 : i32 to index
    %c0_14 = arith.constant 0 : index
    %56 = vector.load %arg4[%55, %c0_14] : memref<16x128xf32, #tpu.memory_space<vmem>>, vector<1x128xf32>
    tpu.vector_store %arg4[%55, %c0_14], %54 {strides = array<i32>} : memref<16x128xf32, #tpu.memory_space<vmem>>, vector<1x128xf32>,
    %c8_i32 = arith.constant 8 : i32
    %57 = arith.addi %0, %c8_i32 : i32
    %58 = arith.index_cast %57 : i32 to index
    %59 = memref.load %arg1[%58] : memref<16xi32, #tpu.memory_space<smem>>
    %60 = arith.index_cast %59 : i32 to index
    %c0_15 = arith.constant 0 : index
    %61 = vector.load %arg2[%60, %c0_15] : memref<64x128xf32, #tpu.memory_space<vmem>>, vector<1x128xf32>
    %62 = arith.index_cast %c8_i32 : i32 to index
    %c0_16 = arith.constant 0 : index
    %63 = vector.load %arg4[%62, %c0_16] : memref<16x128xf32, #tpu.memory_space<vmem>>, vector<1x128xf32>
    tpu.vector_store %arg4[%62, %c0_16], %61 {strides = array<i32>} : memref<16x128xf32, #tpu.memory_space<vmem>>, vector<1x128xf32>,
    %c9_i32 = arith.constant 9 : i32
    %64 = arith.addi %0, %c9_i32 : i32
    %65 = arith.index_cast %64 : i32 to index
    %66 = memref.load %arg1[%65] : memref<16xi32, #tpu.memory_space<smem>>
    %67 = arith.index_cast %66 : i32 to index
    %c0_17 = arith.constant 0 : index
    %68 = vector.load %arg2[%67, %c0_17] : memref<64x128xf32, #tpu.memory_space<vmem>>, vector<1x128xf32>
    %69 = arith.index_cast %c9_i32 : i32 to index
    %c0_18 = arith.constant 0 : index
    %70 = vector.load %arg4[%69, %c0_18] : memref<16x128xf32, #tpu.memory_space<vmem>>, vector<1x128xf32>
    tpu.vector_store %arg4[%69, %c0_18], %68 {strides = array<i32>} : memref<16x128xf32, #tpu.memory_space<vmem>>, vector<1x128xf32>,
    %c10_i32 = arith.constant 10 : i32
    %71 = arith.addi %0, %c10_i32 : i32
    %72 = arith.index_cast %71 : i32 to index
    %73 = memref.load %arg1[%72] : memref<16xi32, #tpu.memory_space<smem>>
    %74 = arith.index_cast %73 : i32 to index
    %c0_19 = arith.constant 0 : index
    %75 = vector.load %arg2[%74, %c0_19] : memref<64x128xf32, #tpu.memory_space<vmem>>, vector<1x128xf32>
    %76 = arith.index_cast %c10_i32 : i32 to index
    %c0_20 = arith.constant 0 : index
    %77 = vector.load %arg4[%76, %c0_20] : memref<16x128xf32, #tpu.memory_space<vmem>>, vector<1x128xf32>
    tpu.vector_store %arg4[%76, %c0_20], %75 {strides = array<i32>} : memref<16x128xf32, #tpu.memory_space<vmem>>, vector<1x128xf32>,
    %c11_i32 = arith.constant 11 : i32
    %78 = arith.addi %0, %c11_i32 : i32
    %79 = arith.index_cast %78 : i32 to index
    %80 = memref.load %arg1[%79] : memref<16xi32, #tpu.memory_space<smem>>
    %81 = arith.index_cast %80 : i32 to index
    %c0_21 = arith.constant 0 : index
    %82 = vector.load %arg2[%81, %c0_21] : memref<64x128xf32, #tpu.memory_space<vmem>>, vector<1x128xf32>
    %83 = arith.index_cast %c11_i32 : i32 to index
    %c0_22 = arith.constant 0 : index
    %84 = vector.load %arg4[%83, %c0_22] : memref<16x128xf32, #tpu.memory_space<vmem>>, vector<1x128xf32>
    tpu.vector_store %arg4[%83, %c0_22], %82 {strides = array<i32>} : memref<16x128xf32, #tpu.memory_space<vmem>>, vector<1x128xf32>,
    %c12_i32 = arith.constant 12 : i32
    %85 = arith.addi %0, %c12_i32 : i32
    %86 = arith.index_cast %85 : i32 to index
    %87 = memref.load %arg1[%86] : memref<16xi32, #tpu.memory_space<smem>>
    %88 = arith.index_cast %87 : i32 to index
    %c0_23 = arith.constant 0 : index
    %89 = vector.load %arg2[%88, %c0_23] : memref<64x128xf32, #tpu.memory_space<vmem>>, vector<1x128xf32>
    %90 = arith.index_cast %c12_i32 : i32 to index
    %c0_24 = arith.constant 0 : index
    %91 = vector.load %arg4[%90, %c0_24] : memref<16x128xf32, #tpu.memory_space<vmem>>, vector<1x128xf32>
    tpu.vector_store %arg4[%90, %c0_24], %89 {strides = array<i32>} : memref<16x128xf32, #tpu.memory_space<vmem>>, vector<1x128xf32>,
    %c13_i32 = arith.constant 13 : i32
    %92 = arith.addi %0, %c13_i32 : i32
    %93 = arith.index_cast %92 : i32 to index
    %94 = memref.load %arg1[%93] : memref<16xi32, #tpu.memory_space<smem>>
    %95 = arith.index_cast %94 : i32 to index
    %c0_25 = arith.constant 0 : index
    %96 = vector.load %arg2[%95, %c0_25] : memref<64x128xf32, #tpu.memory_space<vmem>>, vector<1x128xf32>
    %97 = arith.index_cast %c13_i32 : i32 to index
    %c0_26 = arith.constant 0 : index
    %98 = vector.load %arg4[%97, %c0_26] : memref<16x128xf32, #tpu.memory_space<vmem>>, vector<1x128xf32>
    tpu.vector_store %arg4[%97, %c0_26], %96 {strides = array<i32>} : memref<16x128xf32, #tpu.memory_space<vmem>>, vector<1x128xf32>,
    %c14_i32 = arith.constant 14 : i32
    %99 = arith.addi %0, %c14_i32 : i32
    %100 = arith.index_cast %99 : i32 to index
    %101 = memref.load %arg1[%100] : memref<16xi32, #tpu.memory_space<smem>>
    %102 = arith.index_cast %101 : i32 to index
    %c0_27 = arith.constant 0 : index
    %103 = vector.load %arg2[%102, %c0_27] : memref<64x128xf32, #tpu.memory_space<vmem>>, vector<1x128xf32>
    %104 = arith.index_cast %c14_i32 : i32 to index
    %c0_28 = arith.constant 0 : index
    %105 = vector.load %arg4[%104, %c0_28] : memref<16x128xf32, #tpu.memory_space<vmem>>, vector<1x128xf32>
    tpu.vector_store %arg4[%104, %c0_28], %103 {strides = array<i32>} : memref<16x128xf32, #tpu.memory_space<vmem>>, vector<1x128xf32>,
    %c15_i32 = arith.constant 15 : i32
    %106 = arith.addi %0, %c15_i32 : i32
    %107 = arith.index_cast %106 : i32 to index
    %108 = memref.load %arg1[%107] : memref<16xi32, #tpu.memory_space<smem>>
    %109 = arith.index_cast %108 : i32 to index
    %c0_29 = arith.constant 0 : index
    %110 = vector.load %arg2[%109, %c0_29] : memref<64x128xf32, #tpu.memory_space<vmem>>, vector<1x128xf32>
    %111 = arith.index_cast %c15_i32 : i32 to index
    %c0_30 = arith.constant 0 : index
    %112 = vector.load %arg4[%111, %c0_30] : memref<16x128xf32, #tpu.memory_space<vmem>>, vector<1x128xf32>
    tpu.vector_store %arg4[%111, %c0_30], %110 {strides = array<i32>} : memref<16x128xf32, #tpu.memory_space<vmem>>, vector<1x128xf32>,
    %c16_i32_31 = arith.constant 16 : i32
    %c0_32 = arith.constant 0 : index
    %c0_33 = arith.constant 0 : index
    %113 = vector.load %arg4[%c0_32, %c0_33] : memref<16x128xf32, #tpu.memory_space<vmem>>, vector<16x128xf32>
    %114 = tpu.iota {dimensions = array<i32: 1>} : vector<16x128xi32>
    %c64_i32 = arith.constant 64 : i32
    %115 = vector.broadcast %c64_i32 : i32 to vector<16x128xi32>
    %116 = arith.cmpi slt, %114, %115 : vector<16x128xi32>
    %cst = arith.constant -1.000000e+30 : f32
    %117 = vector.broadcast %cst : f32 to vector<16x128xf32>
    %118 = arith.select %116, %113, %117 : vector<16x128xi1>, vector<16x128xf32>
    %cst_34 = arith.constant dense<0xFF800000> : vector<16xf32>
    %119 = vector.multi_reduction <maximumf>, %118, %cst_34 [1] : vector<16x128xf32> to vector<16xf32>
    %120 = vector.shape_cast %119 : vector<16xf32> to vector<16x1xf32>
    %121 = vector.broadcast %120 : vector<16x1xf32> to vector<16x128xf32>
    %122 = arith.subf %118, %121 : vector<16x128xf32>
    %123 = math.exp %122 : vector<16x128xf32>
    %cst_35 = arith.constant dense<0.000000e+00> : vector<16xf32>
    %124 = vector.multi_reduction <add>, %123, %cst_35 [1] : vector<16x128xf32> to vector<16xf32>
    %125 = vector.shape_cast %124 : vector<16xf32> to vector<16x1xf32>
    %126 = math.log %125 : vector<16x1xf32>
    %127 = arith.addf %120, %126 : vector<16x1xf32>
    %c0_36 = arith.constant 0 : index
    %c0_37 = arith.constant 0 : index
    %128 = vector.load %arg3[%c0_36, %c0_37] : memref<16x1xi32, #tpu.memory_space<vmem>>, vector<16x1xi32>
    %129 = vector.broadcast %128 : vector<16x1xi32> to vector<16x128xi32>
    %130 = arith.cmpi eq, %114, %129 : vector<16x128xi32>
    %cst_38 = arith.constant 0.000000e+00 : f32
    %131 = vector.broadcast %cst_38 : f32 to vector<16x128xf32>
    %132 = arith.select %130, %113, %131 : vector<16x128xi1>, vector<16x128xf32>
    %cst_39 = arith.constant dense<0.000000e+00> : vector<16xf32>
    %133 = vector.multi_reduction <add>, %132, %cst_39 [1] : vector<16x128xf32> to vector<16xf32>
    %134 = vector.shape_cast %133 : vector<16xf32> to vector<16x1xf32>
    %135 = tpu.iota {dimensions = array<i32: 0>} : vector<16x1xi32>
    %136 = vector.broadcast %0 : i32 to vector<16x1xi32>
    %137 = arith.addi %136, %135 : vector<16x1xi32>
    %c16_i32_40 = arith.constant 16 : i32
    %138 = vector.broadcast %c16_i32_40 : i32 to vector<16x1xi32>
    %139 = arith.cmpi slt, %137, %138 : vector<16x1xi32>
    %140 = arith.subf %127, %134 : vector<16x1xf32>
    %cst_41 = arith.constant 0.000000e+00 : f32
    %141 = vector.broadcast %cst_41 : f32 to vector<16x1xf32>
    %142 = arith.select %139, %140, %141 : vector<16x1xi1>, vector<16x1xf32>
    %143 = vector.shape_cast %142 : vector<16x1xf32> to vector<1x16x1xf32>
    %cst_42 = arith.constant dense<0.000000e+00> : vector<1xf32>
    %144 = vector.multi_reduction <add>, %143, %cst_42 [1, 2] : vector<1x16x1xf32> to vector<1xf32>
    %145 = vector.shape_cast %144 : vector<1xf32> to vector<1x1x1xf32>
    %146 = vector.extract %145[0, 0, 0] : f32 from vector<1x1x1xf32>
    %147 = vector.broadcast %146 : f32 to vector<1x1xf32>
    %c0_43 = arith.constant 0 : index
    %c0_44 = arith.constant 0 : index
    %148 = vector.load %arg5[%c0_43, %c0_44] : memref<1x1xf32, #tpu.memory_space<vmem>>, vector<1x1xf32>
    tpu.vector_store %arg5[%c0_43, %c0_44], %147 {strides = array<i32>} : memref<1x1xf32, #tpu.memory_space<vmem>>, vector<1x1xf32>,
    return
  }
  func.func @transform_0(%arg0: i32, %arg1: memref<16xi32, #tpu.memory_space<smem>>) -> (i32, i32) {
    %c0_i32 = arith.constant 0 : i32
    %c0_i32_0 = arith.constant 0 : i32
    %c0_i32_1 = arith.constant 0 : i32
    return %c0_i32, %c0_i32_0 : i32, i32
  }
  func.func @transform_1(%arg0: i32, %arg1: memref<16xi32, #tpu.memory_space<smem>>) -> (i32, i32) {
    %c0_i32 = arith.constant 0 : i32
    %c0_i32_0 = arith.constant 0 : i32
    return %arg0, %c0_i32 : i32, i32
  }
  func.func @transform_2(%arg0: i32, %arg1: memref<16xi32, #tpu.memory_space<smem>>) -> (i32, i32) {
    %c0_i32 = arith.constant 0 : i32
    %c0_i32_0 = arith.constant 0 : i32
    return %arg0, %c0_i32 : i32, i32
  }
  func.func @transform_3(%arg0: i32, %arg1: memref<16xi32, #tpu.memory_space<smem>>) -> (i32, i32) {
    %c0_i32 = arith.constant 0 : i32
    %c0_i32_0 = arith.constant 0 : i32
    return %arg0, %c0_i32 : i32, i32
  }
}

</mosaic_0001>

<bundles_post_ra>
// kernel: _forward_with_loss.1
= control target key start
LH: loop header
LB: loop body
LE: loop exit
PB: predicated region body
PF: predicated region fallthrough
CT: control target
= control target key end

     0   :  { %s368_s18 = smov [#allocation3]   ;;  %s426_s0 = inlined_call_operand.vmem [shape: s32[16], index: 0, kind: input, shape index: {}]   ;;  %s427_s1 = inlined_call_operand.hbm [shape: f32[64,128], index: 1, kind: input, shape index: {}]   ;;  %s428_s2 = inlined_call_operand.vmem [shape: s32[16,1], index: 2, kind: input, shape index: {}]   ;;  %s429_s3 = inlined_call_operand.hbm [shape: f32[16,128], index: 3, kind: output, shape index: {0}]   ;;  %s430_s4 = inlined_call_operand.hbm [shape: f32[1,1], index: 4, kind: output, shape index: {1}]  }
   0x1   :  { %s11_s17 = sshll.u32 %s426_s0, 4  ;;  %s12_s17 = int_to_ptr.vmem [resolvable:$true] %s11_s17 }
   0x2   :  { %14 = dma.vmem_to_smem %s12_s17, 16, %s368_s18, [#allocation2] }
   0x3   :  { %360 = dma.done.wait [#allocation2], 16 }
   0x4   :  { %361 = vsyncadd [#allocation2], 4294967280 }
   0x5   :  { %17 = sfence }
   0x6   :  { %18 = vsyncpa [#allocation5], 0 }
   0x7   :  { %19 = vsyncpa [#allocation6], 0 }
   0x8   :  { %20 = vsyncpa [#allocation9], 0  ;;  %s25_s21 = sshll.u32 %s427_s1, 4  ;;  %s369_s22 = smov [#allocation4]   ;;  %s26_s21 = int_to_ptr.hbm [resolvable:$true] %s25_s21 }
   0x9   :  { %s27_s23 = sshll.u32 %s369_s22, 4  ;;  %s370_s24 = smov 128   ;;  %s28_s23 = int_to_ptr.vmem [resolvable:$true] %s27_s23 }
   0xa   :  { %s371_s25 = smov 8  }
   0xb   :  { %33 = dma.hbm_to_vmem [thread:$0]  %s26_s21, 1024, %s28_s23, [#allocation5], %s370_s24, %s370_s24, %s371_s25  }
   0xc   :  { %362 = dma.done.wait [#allocation5], 1024  }
   0xd   :  { %363 = vsyncadd [#allocation5], 4294966272  ;;  %s41_s0 = sld [smem:[#allocation3]]  ;;  %v372_v2 = vmov 0   ;;  %v147_v3 = vld [vmem:[%s428_s2] sm:$0xff]  ;;  %v122_v8 = vlaneseq  ;;  %v148_v10 = vld [vmem:[%s428_s2 + $0x8] sm:$0xff] }
   0xe   :  { %s242_s26 = sld [smem:[#allocation3 + $0x1]]  ;;  %266 = vset.pattern.permute.xlu1 %v372_v2  ;;  %267 = vset.pattern.permute.xlu0 %v372_v2  ;;  %vm175_vm3 = vcmask 7168   ;;  %vm189_vm4 = vcmask 0  }
   0xf   :  { %s243_s27 = sld [smem:[#allocation3 + $0x2]]  ;;  %150 = vperm.xlu1 %266, %v147_v3   ;;  %v123_v12 = vand.u32 127, %v122_v8 }
  0x10   :  { %s244_s28 = sld [smem:[#allocation3 + $0x3]] }
  0x11   :  { %s245_s29 = sld [smem:[#allocation3 + $0x4]]  ;;  %vm124_vm0 = vcmp.lt.s32.totalorder %v123_v12, 64 }
  0x12   :  { %s246_s30 = sld [smem:[#allocation3 + $0x5]] }
  0x13   :  { %s247_s5 = sld [smem:[#allocation3 + $0x6]]  ;;  %s42_s1 = scalar_lea.vmem [#allocation4], %s41_s0 }
  0x14   :  { %v43_v0 = vld [vmem:[%s42_s1] sm:$0x1]  ;;  %s248_s6 = sld [smem:[#allocation3 + $0x7]]  ;;  %s47_s7 = scalar_lea.vmem [#allocation4], %s242_s26 }
  0x15   :  { %44 = vst [vmem:[#allocation7] sm:$0x1] %v43_v0  ;;  %v48_v1 = vld [vmem:[%s47_s7] sm:$0x1]  ;;  %s52_s10 = scalar_lea.vmem [#allocation4], %s243_s27  ;;  %s249_s18 = sld [smem:[#allocation3 + $0x8]] }
  0x16   :  { %49 = vst [vmem:[#allocation7 + $0x1] sm:$0x1] %v48_v1  ;;  %v53_v4 = vld [vmem:[%s52_s10] sm:$0x1]  ;;  %s57_s11 = scalar_lea.vmem [#allocation4], %s244_s28  ;;  %s250_s19 = sld [smem:[#allocation3 + $0x9]] }
  0x17   :  { %54 = vst [vmem:[#allocation7 + $0x2] sm:$0x1] %v53_v4  ;;  %v58_v5 = vld [vmem:[%s57_s11] sm:$0x1]  ;;  %s62_s12 = scalar_lea.vmem [#allocation4], %s245_s29  ;;  %s251_s20 = sld [smem:[#allocation3 + $0xa]]  ;;  %153 = vperm.xlu1 %266, %v148_v10  }
  0x18   :  { %59 = vst [vmem:[#allocation7 + $0x3] sm:$0x1] %v58_v5  ;;  %v63_v6 = vld [vmem:[%s62_s12] sm:$0x1]  ;;  %s67_s13 = scalar_lea.vmem [#allocation4], %s246_s30  ;;  %s252_s21 = sld [smem:[#allocation3 + $0xb]] }
  0x19   :  { %64 = vst [vmem:[#allocation7 + $0x4] sm:$0x1] %v63_v6  ;;  %v68_v7 = vld [vmem:[%s67_s13] sm:$0x1]  ;;  %s72_s14 = scalar_lea.vmem [#allocation4], %s247_s5  ;;  %s253_s22 = sld [smem:[#allocation3 + $0xc]] }
  0x1a   :  { %69 = vst [vmem:[#allocation7 + $0x5] sm:$0x1] %v68_v7  ;;  %v73_v9 = vld [vmem:[%s72_s14] sm:$0x1]  ;;  %s77_s17 = scalar_lea.vmem [#allocation4], %s248_s6  ;;  %s254_s23 = sld [smem:[#allocation3 + $0xd]] }
  0x1b   :  { %74 = vst [vmem:[#allocation7 + $0x6] sm:$0x1] %v73_v9  ;;  %v78_v11 = vld [vmem:[%s77_s17] sm:$0x1]  ;;  %s255_s0 = sld [smem:[#allocation3 + $0xe]]  ;;  %s82_s26 = scalar_lea.vmem [#allocation4], %s249_s18 }
  0x1c   :  { %79 = vst [vmem:[#allocation7 + $0x7] sm:$0x1] %v78_v11  ;;  %v83_v13 = vld [vmem:[%s82_s26] sm:$0x1]  ;;  %s256_s27 = sld [smem:[#allocation3 + $0xf]]  ;;  %s87_s2 = scalar_lea.vmem [#allocation4], %s250_s19 }
  0x1d   :  { %84 = vst [vmem:[#allocation7 + $0x8] sm:$0x1] %v83_v13  ;;  %v88_v15 = vld [vmem:[%s87_s2] sm:$0x1]  ;;  %s92_s28 = scalar_lea.vmem [#allocation4], %s251_s20  ;;  %s373_s7 = smov [#allocation7]  }
  0x1e   :  { %89 = vst [vmem:[#allocation7 + $0x9] sm:$0x1] %v88_v15  ;;  %v93_v17 = vld [vmem:[%s92_s28] sm:$0x1]  ;;  %s97_s29 = scalar_lea.vmem [#allocation4], %s252_s21  ;;  %s195_s8 = sshll.u32 %s373_s7, 4  ;;  %s196_s8 = int_to_ptr.vmem [resolvable:$true] %s195_s8 }
  0x1f   :  { %94 = vst [vmem:[#allocation7 + $0xa] sm:$0x1] %v93_v17  ;;  %v98_v18 = vld [vmem:[%s97_s29] sm:$0x1]  ;;  %s102_s30 = scalar_lea.vmem [#allocation4], %s253_s22  ;;  %s197_s11 = sshll.u32 %s429_s3, 4  ;;  %s198_s11 = int_to_ptr.hbm [resolvable:$true] %s197_s11 }
  0x20   :  { %v103_v19 = vld [vmem:[%s102_s30] sm:$0x1]  ;;  %99 = vst [vmem:[#allocation7 + $0xb] sm:$0x1] %v98_v18  ;;  %s107_s5 = scalar_lea.vmem [#allocation4], %s254_s23  ;;  %s374_s12 = smov [#allocation8]  }
  0x21   :  { %v108_v20 = vld [vmem:[%s107_s5] sm:$0x1]  ;;  %104 = vst [vmem:[#allocation7 + $0xc] sm:$0x1] %v103_v19  ;;  %s112_s1 = scalar_lea.vmem [#allocation4], %s255_s0  ;;  %s209_s13 = sshll.u32 %s374_s12, 4  ;;  %s210_s13 = int_to_ptr.vmem [resolvable:$true] %s209_s13 }
  0x22   :  { %v113_v21 = vld [vmem:[%s112_s1] sm:$0x1]  ;;  %109 = vst [vmem:[#allocation7 + $0xd] sm:$0x1] %v108_v20  ;;  %s117_s6 = scalar_lea.vmem [#allocation4], %s256_s27  ;;  %s211_s3 = sshll.u32 %s430_s4, 4  ;;  %s212_s3 = int_to_ptr.hbm [resolvable:$true] %s211_s3 }
  0x23   :  { %v120_v14 = vld [vmem:[#allocation7] sm:$0xff]  ;;  %114 = vst [vmem:[#allocation7 + $0xe] sm:$0x1] %v113_v21 }
  0x24   :  { %v125_v16 = vsel %vm124_vm0, %v120_v14, -1e+30  ;;  %v118_v22 = vld [vmem:[%s117_s6] sm:$0x1] }
  0x25   :  { %127 = vmax.xlane.f32.xlu0 %v125_v16  ;;  %119 = vst [vmem:[#allocation7 + $0xf] sm:$0x1] %v118_v22 }
  0x26   :  { %203 = dma.vmem_to_hbm [thread:$0]  %s196_s8, 256, %s198_s11, [#allocation6], %s370_s24, %s370_s24, %s371_s25  }
  0x2c   :  { %v121_v23 = vld [vmem:[#allocation7 + $0x8] sm:$0xff] }
  0x2d   :  { %v126_v24 = vsel %vm124_vm0, %v121_v23, -1e+30 }
  0x2e   :  { %129 = vmax.xlane.f32.xlu0 %v126_v24 }
  0x81   :  { %v151_v25 = vpop.permute.xlu1 %150 }
  0x82   :  { %vm155_vm1 = vcmp.eq.s32.totalorder %v123_v12, %v151_v25 }
  0x83   :  { %v157_v27 = vsel %vm155_vm1, %v120_v14, 0.0 }
  0x84   :  { %159 = vadd.xlane.f32.xlu0 %v157_v27 }
  0x89   :  { %v154_v26 = vpop.permute.xlu1 %153 }
  0x8a   :  { %vm156_vm2 = vcmp.eq.s32.totalorder %v123_v12, %v154_v26 }
  0x8b   :  { %v158_v28 = vsel %vm156_vm2, %v121_v23, 0.0 }
  0x8c   :  { %161 = vadd.xlane.f32.xlu1 %v158_v28 }
  0x98   :  { %v128_v29 = vpop.xlane.xlu0 %127 }
  0x99   :  { %v131_v30 = vsub.f32 %v125_v16, %v128_v29 }
  0x9b   :  { %v133_v31 = vmul.f32 1.442695, %v131_v30 }
  0x9d   :  { %268 = vpow2.f32 %v133_v31 }
  0xa1   :  { %v130_v33 = vpop.xlane.xlu0 %129 }
  0xa2   :  { %v132_v34 = vsub.f32 %v126_v24, %v130_v33 }
  0xa3   :  { %v269_v32 = vpop.eup %268 }
  0xa4   :  { %137 = vadd.xlane.f32.xlu2 %v269_v32  ;;  %v135_v35 = vmul.f32 1.442695, %v132_v34 }
  0xa6   :  { %270 = vpow2.f32 %v135_v35 }
  0xac   :  { %v271_v36 = vpop.eup %270 }
  0xad   :  { %139 = vadd.xlane.f32.xlu2 %v271_v36 }
  0xf7   :  { %v160_v43 = vpop.xlane.xlu0 %159 }
  0xff   :  { %v162_v47 = vpop.xlane.xlu1 %161 }
 0x117   :  { %v138_v37 = vpop.xlane.xlu2 %137 }
 0x118   :  { %272 = vlog2.f32 %v138_v37 }
 0x11e   :  { %v273_v38 = vpop.eup %272 }
 0x11f   :  { %v142_v40 = vmul.f32 0.6931472, %v273_v38 }
 0x120   :  { %v140_v39 = vpop.xlane.xlu2 %139 }
 0x121   :  { %274 = vlog2.f32 %v140_v39  ;;  %v145_v41 = vadd.f32 %v142_v40, %v128_v29 }
 0x123   :  { %v171_v46 = vsub.f32 %v145_v41, %v160_v43 }
 0x125   :  { %v176_v49 = vsel %vm175_vm3, %v171_v46, 0.0 }
 0x127   :  { %v275_v42 = vpop.eup %274 }
 0x128   :  { %v144_v44 = vmul.f32 0.6931472, %v275_v42 }
 0x12a   :  { %v146_v45 = vadd.f32 %v144_v44, %v130_v33 }
 0x12c   :  { %v172_v48 = vsub.f32 %v146_v45, %v162_v47 }
 0x12e   :  { %v177_v50 = vsel %vm175_vm3, %v172_v48, 0.0 }
 0x12f   :  { %v178_v51 = vadd.f32 %v177_v50, %v176_v49 }
 0x131   :  { %179 = vadd.xlane.f32.xlu2 %v178_v51 }
 0x1a4   :  { %v180_v52 = vpop.xlane.xlu2 %179 }
 0x1a5   :  { %v181_v53 = vrot.slane %v180_v52, 4 }
 0x1a7   :  { %v182_v54 = vadd.f32 %v181_v53, %v180_v52 }
 0x1a9   :  { %v183_v55 = vrot.slane %v182_v54, 2 }
 0x1ab   :  { %v184_v56 = vadd.f32 %v183_v55, %v182_v54 }
 0x1ad   :  { %v185_v57 = vrot.slane %v184_v56, 1 }
 0x1af   :  { %v186_v58 = vadd.f32 %v185_v57, %v184_v56 }
 0x1b1   :  { %257 = vpush %v186_v58 }
 0x1e2   :  { %s258_s16 = spop %257 }
 0x1e3   :  { %v188_v59 = vstv %s258_s16 }
 0x1e4   :  { %190 = vst.msk [vmem:[#allocation8] sm:$0x1] %vm189_vm4, %v188_v59 }
 0x1e5   :  { %214 = dma.vmem_to_hbm [thread:$0]  %s210_s13, 16, %s212_s3, [#allocation9]  }
 0x1e6   :  { %364 = dma.done.wait [#allocation6], 256  }
 0x1e7   :  { %365 = vsyncadd [#allocation6], 4294967040 }
 0x1e8   :  { %366 = dma.done.wait [#allocation9], 16  }
 0x1e9   :  { %367 = vsyncadd [#allocation9], 4294967280 }
 0x1ea   :  { %223 = vsyncpa [#allocation5], 1 }
 0x1eb   :  { %224 = vsyncpa [#allocation6], 1 }
 0x1ec   :  { %225 = vsyncpa [#allocation9], 1 }

</bundles_post_ra>
